<compile_context>
chip_gen: v7x
topology: tpu7x:2x2x1
jax: 0.10.0
libtpu: 0.0.40
codegen_flags: <defaults>
</compile_context>

<pallas_src>
import math
import functools

import jax
import jax.numpy as jnp
import numpy as np
from jax import lax
from jax.experimental import pallas as pl
from jax.experimental.pallas import tpu as pltpu


def _choose_row_tile(L):
    """Largest tile (multiple of 128 preferred, else of 8) that divides L."""
    for t in (512, 256, 128, 64, 32, 16, 8):
        if L % t == 0:
            return t
    return L


def _vmem_limit(est_bytes):
    # Raise scoped VMEM above the 16/32 MiB defaults, but stay under v7x's
    # 64 MiB physical VMEM.
    return int(min(max(2 * est_bytes, 32 * 1024 * 1024), 64 * 1024 * 1024))


# ----------------------------------------------------------------------------
# Projection kernel: y = x @ W + b  (full output width, weight VMEM-resident)
# ----------------------------------------------------------------------------
def _linear_kernel(x_ref, w_ref, b_ref, o_ref):
    y = jnp.dot(x_ref[0], w_ref[...], preferred_element_type=jnp.float32)
    o_ref[0] = (y + b_ref[...].astype(jnp.float32)).astype(o_ref.dtype)


def _linear(x, w_t, b, out_dtype):
    B, L, H = x.shape
    Ho = w_t.shape[1]
    tl = _choose_row_tile(L)
    n_l = L // tl

    bpe_x = jnp.dtype(x.dtype).itemsize
    bpe_w = jnp.dtype(w_t.dtype).itemsize
    bpe_o = jnp.dtype(out_dtype).itemsize
    est = 2 * (tl * H * bpe_x + tl * Ho * bpe_o) + H * Ho * bpe_w + Ho * 4

    return pl.pallas_call(
        _linear_kernel,
        out_shape=jax.ShapeDtypeStruct((B, L, Ho), out_dtype),
        grid=(B, n_l),
        in_specs=[
            pl.BlockSpec((1, tl, H), lambda bi, li: (bi, li, 0)),
            pl.BlockSpec((H, Ho), lambda bi, li: (0, 0)),   # resident weight
            pl.BlockSpec((1, Ho), lambda bi, li: (0, 0)),   # resident bias
        ],
        out_specs=pl.BlockSpec((1, tl, Ho), lambda bi, li: (bi, li, 0)),
        compiler_params=pltpu.CompilerParams(
            dimension_semantics=("parallel", "parallel"),
            vmem_limit_bytes=_vmem_limit(est)),
    )(x, w_t, b)


# ----------------------------------------------------------------------------
# Attention kernel (inputs are already projected; scale folded into Q)
# ----------------------------------------------------------------------------
def _attn_kernel(*refs, n_heads, head_dim, has_mask, write_attn):
    it = iter(refs)
    q_ref = next(it)                              # (1, tq, H)  projected & scaled
    k_ref = next(it)                              # (1, Lk, H)  projected
    v_ref = next(it)                              # (1, Lk, H)  projected
    mask_ref = next(it) if has_mask else None     # (1, tq, Lk) float 0/1
    wo_ref = next(it)                             # (H, H)      resident
    bo_ref = next(it)                             # (1, H)
    out_ref = next(it)                            # (1, tq, H)
    attn_ref = next(it) if write_attn else None   # (1, n_heads, tq, Lk)

    q = q_ref[0]                                  # (tq, H)
    k = k_ref[0]                                  # (Lk, H)
    v = v_ref[0]                                  # (Lk, H)

    if has_mask:
        mask_zero = mask_ref[0] == 0.0            # (tq, Lk) bool
        neg_big = jnp.float32(-1e10)

    ctx_parts = []
    for h in range(n_heads):                      # static loop -> static lane slices
        sl = slice(h * head_dim, (h + 1) * head_dim)
        qh = q[:, sl]                             # (tq, hd)
        kh = k[:, sl]                             # (Lk, hd)
        vh = v[:, sl]                             # (Lk, hd)

        # energy = Qh @ Kh^T, contracting last dims (no materialized transpose).
        energy = lax.dot_general(
            qh, kh, dimension_numbers=(((1,), (1,)), ((), ())),
            preferred_element_type=jnp.float32)   # (tq, Lk)
        if has_mask:
            energy = jnp.where(mask_zero, neg_big, energy)

        # softmax over the last axis (matches torch.softmax(energy, dim=-1))
        m = jnp.max(energy, axis=-1, keepdims=True)
        p = jnp.exp(energy - m)
        denom = jnp.sum(p, axis=-1, keepdims=True)
        attn = p * pl.reciprocal(denom, approx=False)

        if write_attn:
            attn_ref[0, h] = attn

        ctx_parts.append(
            jnp.dot(attn.astype(v.dtype), vh, preferred_element_type=jnp.float32))

    # Single full-contraction output projection: (tq, H) @ (H, H)
    ctx = jnp.concatenate(ctx_parts, axis=-1).astype(wo_ref.dtype)      # (tq, H)
    out = jnp.dot(ctx, wo_ref[...], preferred_element_type=jnp.float32)
    out_ref[0] = (out + bo_ref[...].astype(jnp.float32)).astype(out_ref.dtype)


def mha_forward(query, key, value, params, n_heads, mask=None,
                return_attention=True, compute_dtype=jnp.float32):
    query = jnp.asarray(query, jnp.float32)
    key = jnp.asarray(key, jnp.float32)
    value = jnp.asarray(value, jnp.float32)

    B, Lq, H = query.shape
    Lk = key.shape[1]
    assert H % n_heads == 0
    hd = H // n_heads
    inv_scale = 1.0 / math.sqrt(hd)

    wq_t, bq, wk_t, bk, wv_t, bv, wo_t, bo = params
    cd = jnp.dtype(compute_dtype)

    # Full-width projections (once per row tile; 1/sqrt(hd) folded into Q proj).
    q_proj = _linear(query.astype(cd), (wq_t * inv_scale).astype(cd),
                     (bq * inv_scale).astype(jnp.float32), cd)
    k_proj = _linear(key.astype(cd), wk_t.astype(cd), bk.astype(jnp.float32), cd)
    v_proj = _linear(value.astype(cd), wv_t.astype(cd), bv.astype(jnp.float32), cd)

    tq = _choose_row_tile(Lq)
    n_q = Lq // tq

    has_mask = mask is not None
    write_attn = bool(return_attention)

    operands = [q_proj, k_proj, v_proj]
    in_specs = [
        pl.BlockSpec((1, tq, H), lambda b, qi: (b, qi, 0)),
        pl.BlockSpec((1, Lk, H), lambda b, qi: (b, 0, 0)),
        pl.BlockSpec((1, Lk, H), lambda b, qi: (b, 0, 0)),
    ]
    if has_mask:
        # Single (B, Lq, Lk) 0/1 mask shared across heads (much smaller than a
        # broadcast (B, n_heads, Lq, Lk) tensor). Head-dependent masks unsupported.
        mask_b = jnp.broadcast_to(jnp.asarray(mask), (B, 1, Lq, Lk))
        mask_b = mask_b.reshape(B, Lq, Lk).astype(jnp.float32)
        operands.append(mask_b)
        in_specs.append(pl.BlockSpec((1, tq, Lk), lambda b, qi: (b, qi, 0)))

    operands += [wo_t.astype(cd), bo.astype(jnp.float32)]
    in_specs += [
        pl.BlockSpec((H, H), lambda b, qi: (0, 0)),   # resident Wo
        pl.BlockSpec((1, H), lambda b, qi: (0, 0)),   # resident bo
    ]

    if write_attn:
        out_shape = (
            jax.ShapeDtypeStruct((B, Lq, H), jnp.float32),
            jax.ShapeDtypeStruct((B, n_heads, Lq, Lk), jnp.float32),
        )
        out_specs = [
            pl.BlockSpec((1, tq, H), lambda b, qi: (b, qi, 0)),
            pl.BlockSpec((1, n_heads, tq, Lk), lambda b, qi: (b, 0, qi, 0)),
        ]
    else:
        out_shape = jax.ShapeDtypeStruct((B, Lq, H), jnp.float32)
        out_specs = pl.BlockSpec((1, tq, H), lambda b, qi: (b, qi, 0))

    # VMEM footprint estimate (double-buffered blocks) -> scoped VMEM limit.
    bpe = cd.itemsize
    est = (2 * (tq * H * bpe + 2 * Lk * H * bpe
                + (tq * Lk * 4 if has_mask else 0)
                + tq * H * 4
                + (n_heads * tq * Lk * 4 if write_attn else 0))
           + H * H * bpe + H * 4)

    kernel = functools.partial(_attn_kernel, n_heads=n_heads, head_dim=hd,
                               has_mask=has_mask, write_attn=write_attn)

    result = pl.pallas_call(
        kernel,
        out_shape=out_shape,
        grid=(B, n_q),
        in_specs=in_specs,
        out_specs=out_specs,
        compiler_params=pltpu.CompilerParams(
            dimension_semantics=("parallel", "parallel"),
            vmem_limit_bytes=_vmem_limit(est)),
    )(*operands)

    if write_attn:
        out, attn = result
        return out, attn
    return result


# ----------------------------------------------------------------------------
# Pure-JAX reference mirroring the PyTorch forward
# ----------------------------------------------------------------------------
def _reference_mha(query, key, value, params, n_heads, mask=None):
    wq_t, bq, wk_t, bk, wv_t, bv, wo_t, bo = params
    B, Lq, H = query.shape
    Lk = key.shape[1]
    hd = H // n_heads
    Q = query @ wq_t + bq
    K = key @ wk_t + bk
    V = value @ wv_t + bv
    Q = Q.reshape(B, Lq, n_heads, hd).transpose(0, 2, 1, 3)
    K = K.reshape(B, Lk, n_heads, hd).transpose(0, 2, 1, 3)
    V = V.reshape(B, Lk, n_heads, hd).transpose(0, 2, 1, 3)
    energy = jnp.einsum('bhqd,bhkd->bhqk', Q, K) / math.sqrt(hd)
    if mask is not None:
        energy = jnp.where(mask == 0, -1e10, energy)
    attn = jax.nn.softmax(energy, axis=-1)
    x = jnp.einsum('bhqk,bhkd->bhqd', attn, V)
    x = x.transpose(0, 2, 1, 3).reshape(B, Lq, H)
    out = x @ wo_t + bo
    return out, attn


def init_params(key, hid_dim):
    """Deterministic Linear params. Stored transposed: y = x @ W_t + b."""
    ks = jax.random.split(key, 8)
    bound = 1.0 / math.sqrt(hid_dim)

    def lin(kw, kb):
        w_t = jax.random.uniform(kw, (hid_dim, hid_dim), jnp.float32, -bound, bound)
        b = jax.random.uniform(kb, (1, hid_dim), jnp.float32, -bound, bound)
        return w_t, b

    wq_t, bq = lin(ks[0], ks[1])
    wk_t, bk = lin(ks[2], ks[3])
    wv_t, bv = lin(ks[4], ks[5])
    wo_t, bo = lin(ks[6], ks[7])
    return (wq_t, bq, wk_t, bk, wv_t, bv, wo_t, bo)


if __name__ == "__main__":
    B, Lq, Lk, H, n_heads = 2, 8, 8, 32, 4

    root = jax.random.PRNGKey(0)
    kq, kk, kv, kp = jax.random.split(root, 4)
    query = jax.random.normal(kq, (B, Lq, H), jnp.float32)
    key_t = jax.random.normal(kk, (B, Lk, H), jnp.float32)
    value = jax.random.normal(kv, (B, Lk, H), jnp.float32)
    params = init_params(kp, H)

    # 1) no mask
    out, attn = mha_forward(query, key_t, value, params, n_heads, mask=None)
    out, attn = jax.block_until_ready((out, attn))
    ref_out, ref_attn = _reference_mha(query, key_t, value, params, n_heads, mask=None)
    np.testing.assert_allclose(np.asarray(out), np.asarray(ref_out), rtol=2e-5, atol=2e-5)
    np.testing.assert_allclose(np.asarray(attn), np.asarray(ref_attn), rtol=2e-5, atol=2e-5)

    # 2) causal mask (broadcastable (1, 1, Lq, Lk), as in the PyTorch usage)
    causal = jnp.tril(jnp.ones((Lq, Lk), jnp.int32))[None, None]
    out_m, attn_m = mha_forward(query, key_t, value, params, n_heads, mask=causal)
    out_m, attn_m = jax.block_until_ready((out_m, attn_m))
    ref_out_m, ref_attn_m = _reference_mha(query, key_t, value, params, n_heads, mask=causal)
    np.testing.assert_allclose(np.asarray(out_m), np.asarray(ref_out_m), rtol=2e-5, atol=2e-5)
    np.testing.assert_allclose(np.asarray(attn_m), np.asarray(ref_attn_m), rtol=2e-5, atol=2e-5)

    print("KERNEL_OK")
</pallas_src>

<mosaic_0001>
module attributes {stable_mosaic.version = 11 : i64} {
  func.func @_linear_kernel(%arg0: i32, %arg1: i32, %arg2: memref<1x8x32xf32, #tpu.memory_space<vmem>>, %arg3: memref<32x32xf32, #tpu.memory_space<vmem>>, %arg4: memref<1x32xf32, #tpu.memory_space<vmem>>, %arg5: memref<1x8x32xf32, #tpu.memory_space<vmem>>) attributes {dimension_semantics = [#tpu.dimension_semantics<parallel>, #tpu.dimension_semantics<parallel>], iteration_bounds = array<i64: 2, 1>, scalar_prefetch = 0 : i64, scratch_operands = 0 : i64, tpu.core_type = #tpu.core_type<tc>, window_params = [{transform_indices = @transform_0, window_bounds = array<i64: 1, 8, 32>}, {pipeline_mode = #tpu.pipeline_mode<synchronous>, transform_indices = @transform_1, window_bounds = array<i64: 32, 32>}, {pipeline_mode = #tpu.pipeline_mode<synchronous>, transform_indices = @transform_2, window_bounds = array<i64: 1, 32>}, {transform_indices = @transform_3, window_bounds = array<i64: 1, 8, 32>}]} {
    %c0 = arith.constant 0 : index
    %c0_0 = arith.constant 0 : index
    %c0_1 = arith.constant 0 : index
    %0 = vector.load %arg2[%c0, %c0_0, %c0_1] : memref<1x8x32xf32, #tpu.memory_space<vmem>>, vector<1x8x32xf32>
    %1 = vector.shape_cast %0 : vector<1x8x32xf32> to vector<8x32xf32>
    %c0_2 = arith.constant 0 : index
    %c0_3 = arith.constant 0 : index
    %2 = vector.load %arg3[%c0_2, %c0_3] : memref<32x32xf32, #tpu.memory_space<vmem>>, vector<32x32xf32>
    %cst = arith.constant dense<0.000000e+00> : vector<8x32xf32>
    %3 = tpu.matmul %1, %2, %cst {dimension_numbers = #tpu.dot_dimension_numbers<[1], [0], [0], [1], [0, 0, 1, 1], [], []>} : vector<8x32xf32>, vector<32x32xf32>, vector<8x32xf32> -> vector<8x32xf32>
    %c0_4 = arith.constant 0 : index
    %c0_5 = arith.constant 0 : index
    %4 = vector.load %arg4[%c0_4, %c0_5] : memref<1x32xf32, #tpu.memory_space<vmem>>, vector<1x32xf32>
    %5 = vector.broadcast %4 : vector<1x32xf32> to vector<8x32xf32>
    %6 = arith.addf %3, %5 : vector<8x32xf32>
    %c0_6 = arith.constant 0 : index
    %c0_7 = arith.constant 0 : index
    %c0_8 = arith.constant 0 : index
    %7 = vector.load %arg5[%c0_6, %c0_7, %c0_8] : memref<1x8x32xf32, #tpu.memory_space<vmem>>, vector<1x8x32xf32>
    %8 = vector.shape_cast %7 : vector<1x8x32xf32> to vector<8x32xf32>
    %9 = vector.shape_cast %6 : vector<8x32xf32> to vector<1x8x32xf32>
    tpu.vector_store %arg5[%c0_6, %c0_7, %c0_8], %9 {strides = array<i32>} : memref<1x8x32xf32, #tpu.memory_space<vmem>>, vector<1x8x32xf32>,
    return
  }
  func.func @transform_0(%arg0: i32, %arg1: i32) -> (i32, i32, i32) {
    %c0_i32 = arith.constant 0 : i32
    %c0_i32_0 = arith.constant 0 : i32
    return %arg0, %arg1, %c0_i32 : i32, i32, i32
  }
  func.func @transform_1(%arg0: i32, %arg1: i32) -> (i32, i32) {
    %c0_i32 = arith.constant 0 : i32
    %c0_i32_0 = arith.constant 0 : i32
    %c0_i32_1 = arith.constant 0 : i32
    return %c0_i32, %c0_i32_0 : i32, i32
  }
  func.func @transform_2(%arg0: i32, %arg1: i32) -> (i32, i32) {
    %c0_i32 = arith.constant 0 : i32
    %c0_i32_0 = arith.constant 0 : i32
    %c0_i32_1 = arith.constant 0 : i32
    return %c0_i32, %c0_i32_0 : i32, i32
  }
  func.func @transform_3(%arg0: i32, %arg1: i32) -> (i32, i32, i32) {
    %c0_i32 = arith.constant 0 : i32
    %c0_i32_0 = arith.constant 0 : i32
    return %arg0, %arg1, %c0_i32 : i32, i32, i32
  }
}

</mosaic_0001>

<bundles_post_ra>
// kernel: tpu_custom_call.1
= control target key start
LH: loop header
LB: loop body
LE: loop exit
PB: predicated region body
PF: predicated region fallthrough
CT: control target
= control target key end

     0   :  { %8 = vsyncpa [#allocation3], 0  ;;  %s918_s0 = inlined_call_operand.hbm [shape: f32[2,8,32], index: 0, kind: input, shape index: {}]   ;;  %s919_s1 = inlined_call_operand.hbm [shape: f32[32,32], index: 1, kind: input, shape index: {}]   ;;  %s920_s2 = inlined_call_operand.vmem [shape: f32[1,32], index: 2, kind: input, shape index: {}]   ;;  %s921_s3 = inlined_call_operand.hbm [shape: f32[2,8,32], index: 3, kind: output, shape index: {}]  }
   0x1   :  { %10 = vsyncpa [#allocation3 + $0x1], 0 }
   0x2   :  { %11 = vsyncpa [#allocation6], 0 }
   0x3   :  { %12 = vsyncpa [#allocation4], 0 }
   0x4   :  { %14 = vsyncpa [#allocation4 + $0x1], 0  ;;  %s701_s12 = smov 0   ;;  %s703_s13 = smov 0  }
   0x5   :  { %s705_s14 = smov 0   ;;  %s707_s15 = smov 0  }
   0x6   :  { %s709_s16 = smov 0   ;;  %s711_s17 = smov 0  }
   0x7 LB: > { %s410_s18 = sadd.s32 4294967295, %s671_s17   ;;  %s411_s19 = sadd.s32 4294967294, %s671_s17   ;;  %s671_s17 = sphi %s711_s17, %s20_s17   ;;  %s667_s16 = sphi %s709_s16, %s945_s16   ;;  %s663_s15 = sphi %s707_s15, %s944_s15   ;;  %s659_s14 = sphi %s705_s14, %s943_s14   ;;  %s655_s13 = sphi %s703_s13, %s942_s13   ;;  %s651_s12 = sphi %s701_s12, %s941_s12  }
   0x8   : > { %p54_p0 = scmp.ne.s32.totalorder %s655_s13, %s651_s12  ;;  %p735_p1 = scmp.eq.s32.totalorder %s410_s18, 0 }
   0x9   : > { %p739_p2 = scmp.eq.s32.totalorder %s410_s18, 1  ;;  %p128_p3 = scmp.eq.s32.totalorder %s411_s19, 1 }
   0xa   : > { %s926_s20 = scalar_select %p735_p1, 1, 0 }
   0xb   : > { %s927_s21 = scalar_select %p739_p2, 1, 0 }
   0xc   : > { %p745_p4 = por %p735_p1, %p54_p0  ;;  %p412_p5 = scmp.ge.s32.totalorder %s671_s17, 1 }
   0xd   : > { %p750_p6 = por %p128_p3, %p54_p0  ;;  %p135_p7 = scmp.lt.s32.totalorder %s671_s17, 3 }
   0xe   : > { %s928_s22 = scalar_select %p745_p4, 1, 0 }
   0xf   : > { %s929_s23 = scalar_select %p750_p6, 1, 0 }
  0x10   : > { %p755_p8 = pnand %p412_p5, %p135_p7  ;;  %s673_s25 = smov [#allocation5]  }
  0x11   : > { %s147_s26 = sshll.u32 %s673_s25, 4  ;;  %s32_s28 = sadd.s32 1, %s667_s16  ;;  %s148_s26 = int_to_ptr.vmem [resolvable:$true] %s147_s26 }
  0x12   : > { %s930_s24 = scalar_select %p755_p8, 1, 0 }
  0x13   : > { %p457_p9 = pneg %p755_p8  ;;  %s527_s4 = scalar_lea.hbm %s919_s1, 512 }
  0x14   : > { %p528_p12 = scmp.ne.s32.totalorder %s919_s1, %s527_s4  ;;  %p534_p5 = scmp.lt.u32.totalorder %s527_s4, %s919_s1 }
  0x15   : > { %p764_p11 = pnand %p457_p9, %p735_p1 }
  0x17   : > { %p529_p13 = pneg %p764_p11 }
  0x19   : > { %p530_p0 = pnand %p529_p13, %p528_p12 }
  0x1b   : > { %p531_p3 = pneg %p530_p0 }
  0x1d   : > { %p536_p7 = pnand %p534_p5, %p531_p3 }
  0x1f   : > { %539 = shalt.err (!%p536_p7)
}
  0x20   : > { %s540_s9 = scalar_lea.vmem %s148_s26, 512  ;;  %p548_p1 = scmp.lt.s32.totalorder %s148_s26, %s148_s26 }
  0x21   : > { %p541_p9 = scmp.ne.s32.totalorder %s148_s26, %s540_s9  ;;  %p549_p4 = scmp.lt.s32.totalorder %s540_s9, %s540_s9 }
  0x23   : > { %p543_p10 = pnand %p541_p9, %p529_p13  ;;  %p550_p8 = por %p549_p4, %p548_p1 }
  0x25   : > { %p544_p6 = pneg %p543_p10 }
  0x27   : > { %p551_p2 = pnand %p550_p8, %p544_p6 }
  0x29   : > { %554 = shalt.err (!%p551_p2)
}
  0x2a   : > { %s674_s10 = smov 128   ;;  %s675_s11 = smov 8  }
  0x2b   : > { %460 = dma.hbm_to_vmem [thread:$0]  (!%p764_p11), %s919_s1, 512, %s148_s26, [#allocation6], %s674_s10, %s674_s10, %s675_s11  }
  0x2c   : > { %p34_p1 = scmp.ge.s32.totalorder %s32_s28, 2  ;;  %s41_s25 = sadd.s32 1, %s659_s14 }
  0x2d   : > { %p48_p2 = scmp.ne.s32.totalorder %s659_s14, %s655_s13  ;;  %p49_p4 = scmp.eq.s32.totalorder %s671_s17, 0 }
  0x2e   : > { %s947_s28 = smov (%p34_p1, %s32_s28), 0  ;;  %p933_p8 = scmp.ne.s32.totalorder %s927_s21, 0 }
  0x2f   : > { %p791_p6 = por %p49_p4, %p48_p2  ;;  %s36_s27 = ssub.s32 %s667_s16, %s947_s28 }
  0x30   : > { %p797_p10 = por %p933_p8, %p48_p2  ;;  %p470_p12 = scmp.lt.s32.totalorder %s671_s17, 2 }
  0x31   : > { %p39_p11 = scmp.eq.s32.totalorder %s36_s27, 0  ;;  %s164_s26 = sand.u32 1, %s659_s14  }
  0x32   : > { %s415_s4 = sshll.u32 %s164_s26, 3  ;;  %s416_s6 = sshll.u32 %s667_s16, 7 }
  0x33   : > { %s806_s5 = scalar_select %p39_p11, %s659_s14, %s41_s25  }
  0x34   : > { %s812_s9 = scalar_lea.hbm %s918_s0, %s416_s6  ;;  %s168_s21 = scalar_lea.vmem [#allocation2], %s415_s4 }
  0x35   : > { %s176_s10 = sshll.u32 %s168_s21, 4  ;;  %p818_p13 = pnand %p470_p12, %p791_p6  ;;  %s814_s10 = int_to_ptr.vmem [resolvable:$true] %s176_s10 }
  0x36   : > { %s165_s18 = scalar_lea.sflag [#allocation3], %s164_s26  ;;  %s555_s19 = scalar_lea.hbm %s812_s9, 128 }
  0x37   : > { %p556_p0 = scmp.ne.s32.totalorder %s812_s9, %s555_s19  ;;  %p557_p3 = pneg %p818_p13 }
  0x38   : > { %s560_s4 = scalar_lea.hbm %s918_s0, 256  ;;  %p561_p9 = scmp.lt.u32.totalorder %s812_s9, %s918_s0 }
  0x39   : > { %p558_p5 = pnand %p557_p3, %p556_p0  ;;  %p562_p1 = scmp.lt.u32.totalorder %s560_s4, %s555_s19 }
  0x3a   : > { %p564_p4 = scmp.lt.u32.totalorder %s555_s19, %s812_s9 }
  0x3b   : > { %p559_p7 = pneg %p558_p5  ;;  %p563_p2 = por %p562_p1, %p561_p9 }
  0x3d   : > { %p565_p6 = por %p564_p4, %p563_p2 }
  0x3f   : > { %p566_p8 = pnand %p565_p6, %p559_p7 }
  0x41   : > { %569 = shalt.err (!%p566_p8)
}
  0x42   : > { %s570_s26 = scalar_lea.vmem %s814_s10, 128  ;;  %s676_s7 = smov [#allocation2]  }
  0x43   : > { %p571_p12 = scmp.ne.s32.totalorder %s814_s10, %s570_s26  ;;  %s575_s8 = sshll.u32 %s676_s7, 4  ;;  %s576_s8 = int_to_ptr.vmem [resolvable:$false] %s575_s8 }
  0x44   : > { %s577_s21 = scalar_lea.vmem %s576_s8, 256  ;;  %p578_p5 = scmp.lt.s32.totalorder %s814_s10, %s576_s8 }
  0x45   : > { %p573_p11 = pnand %p571_p12, %p557_p3  ;;  %p579_p9 = scmp.lt.s32.totalorder %s577_s21, %s570_s26 }
  0x47   : > { %p574_p0 = pneg %p573_p11  ;;  %p580_p1 = por %p579_p9, %p578_p5 }
  0x49   : > { %p581_p2 = pnand %p580_p1, %p574_p0 }
  0x4b   : > { %584 = shalt.err (!%p581_p2)
}
  0x4c   : > { %464 = dma.hbm_to_vmem [thread:$0]  (!%p818_p13), %s812_s9, 128, %s814_s10, %s165_s18  }
  0x4d   : > { %p936_p7 = scmp.ne.s32.totalorder %s930_s24, 0 }
  0x4e   : > { %s850_s19 = sand.u32 (!%p936_p7), 1, %s655_s13   ;;  %p937_p3 = scmp.ne.s32.totalorder (!%p936_p7), %s928_s22, 0 }
  0x4f   : > { %185 = sbr.rel (%p936_p7) target bundleno = 329 (0x149), region = 32  ;;  %s418_s25 = sshll.u32 (!%p936_p7), %s850_s19, 3 }
  0x50   : > { %s188_s27 = scalar_lea.sflag (!%p936_p7), [#allocation3], %s850_s19  ;;  %s191_s4 = scalar_lea.vmem (!%p936_p7), [#allocation2], %s418_s25 }
  0x56   : > { %638 = dma.done.wait (%p937_p3), %s188_s27, 128  }
  0x57   : > { %640 = vsyncadd (%p937_p3), %s188_s27, 4294967168  ;;  %p938_p4 = scmp.ne.s32.totalorder %s926_s20, 0 }
  0x59   : > { %642 = dma.done.wait (%p938_p4), [#allocation6], 512  }
  0x5a   : > { %644 = vsyncadd (%p938_p4), [#allocation6], 4294966784  ;;  %v677_v0 = vmov 0.0|0.0   ;;  %vm678_vm0 = vmmov 0   ;;  %v679_v1 = vmov 0.0   ;;  %v219_v2 = vld [vmem:[#allocation5] sm:$0xff] }
  0x5b   : > { %443 = vmatprep.subr.bf16.mxu0 %v677_v0  ;;  %440 = vmatprep.mubr.msk.f32.mxu0 %vm678_vm0, %v679_v1  ;;  %v220_v3 = vld [vmem:[#allocation5 + $0x8] sm:$0xff]  ;;  %v221_v4 = vld [vmem:[#allocation5 + $0x10] sm:$0xff]  ;;  %v222_v6 = vld [vmem:[#allocation5 + $0x18] sm:$0xff]  ;;  %vm230_vm1 = vcmask 261120   ;;  %s424_s24 = sshll.u32 %s663_s15, 7  ;;  %s217_s9 = scalar_lea.vmem [#allocation7], %s418_s25 }
  0x5c   : > { %v444_v5 = vpack.c.bf16 %v220_v3, %v219_v2  ;;  %v447_v7 = vpack.c.bf16 %v222_v6, %v221_v4  ;;  %v218_v8 = vld [vmem:[%s191_s4] sm:$0xff]  ;;  %s320_s10 = sshll.u32 %s217_s9, 4  ;;  %s869_s29 = scalar_lea.hbm %s921_s3, %s424_s24  ;;  %s871_s10 = int_to_ptr.vmem [resolvable:$true] %s320_s10 }
  0x5d   : > { %v421_v9 = vld [vmem:[%s920_s2] ss:$0 sm:$0xff]  ;;  %s306_s6 = scalar_lea.sflag [#allocation4], %s850_s19  ;;  %s585_s26 = scalar_lea.vmem %s871_s10, 128 }
  0x5e   : > { %445 = vmatpush3.bf16.msra.mxu0 %v444_v5  ;;  %p586_p13 = scmp.ne.s32.totalorder %s871_s10, %s585_s26  ;;  %s680_s15 = smov [#allocation7]  }
  0x5f   : > { %446 = vmatprep.subr.bf16.mxu0 %v677_v0  ;;  %s589_s7 = sshll.u32 %s680_s15, 4  ;;  %s590_s7 = int_to_ptr.vmem [resolvable:$false] %s589_s7 }
  0x60   : > { %p587_p6 = pnand %p586_p13, %p797_p10  ;;  %s591_s8 = scalar_lea.vmem %s590_s7, 256 }
  0x61   : > { %p592_p12 = scmp.lt.s32.totalorder %s871_s10, %s590_s7  ;;  %p593_p11 = scmp.lt.s32.totalorder %s591_s8, %s585_s26 }
  0x62   : > { %448 = vmatpush3.bf16.msra.mxu0 %v447_v7  ;;  %p588_p8 = pneg %p587_p6 }
  0x63   : > { %p594_p0 = por %p593_p11, %p592_p12 }
  0x65   : > { %441 = vmatmul.mubr.msk.f32.vlgmr.msra.gmra.mrb[0].mxu0 %vm230_vm1, %v218_v8  ;;  %p595_p5 = pnand %p594_p0, %p588_p8 }
 0x138   : > { %v300_v10 = vpop.f32.mrb[0].mxu0 }
 0x139   : > { %v301_v11 = vadd.f32 %v421_v9, %v300_v10  ;;  %v442_v12 = vpop.f32.mrb[1].mxu0 }
 0x13b   : > { %304 = vst.msk [vmem:[%s217_s9] sm:$0xff] %vm230_vm1, %v301_v11 }
 0x13c   : > { %598 = shalt.err (!%p595_p5)
}
 0x13d   : > { %s599_s21 = scalar_lea.hbm %s869_s29, 128  ;;  %s603_s27 = scalar_lea.hbm %s921_s3, 256 }
 0x13e   : > { %p600_p9 = scmp.ne.s32.totalorder %s869_s29, %s599_s21  ;;  %p604_p7 = scmp.lt.u32.totalorder %s869_s29, %s921_s3 }
 0x13f   : > { %p605_p3 = scmp.lt.u32.totalorder %s603_s27, %s599_s21  ;;  %p607_p13 = scmp.lt.u32.totalorder %s599_s21, %s869_s29 }
 0x140   : > { %p601_p1 = pnand %p600_p9, %p797_p10 }
 0x141   : > { %p606_p4 = por %p605_p3, %p604_p7 }
 0x142   : > { %p602_p2 = pneg %p601_p1 }
 0x143   : > { %p608_p6 = por %p607_p13, %p606_p4 }
 0x145   : > { %p609_p8 = pnand %p608_p6, %p602_p2 }
 0x147   : > { %612 = shalt.err (!%p609_p8)
}
 0x148   : > { %455 = dma.vmem_to_hbm [thread:$0]  (%p797_p10), %s871_s10, 128, %s869_s29, %s306_s6  }
 0x149 PF: > { %s332_s22 = sand.u32 1, %s651_s12   ;;  %p939_p12 = scmp.ne.s32.totalorder %s929_s23, 0 }
 0x14a   : > { %p940_p11 = scmp.ge.s32.totalorder %s671_s17, 2  ;;  %s333_s24 = scalar_lea.sflag [#allocation4], %s332_s22 }
 0x14c   : > { %p466_p0 = pnand %p940_p11, %p939_p12 }
 0x14e   : > { %646 = dma.done.wait (!%p466_p0), %s333_s24, 128  }
 0x14f   : > { %648 = vsyncadd (!%p466_p0), %s333_s24, 4294967168  ;;  %s20_s17 = sadd.s32 1, %s671_s17   ;;  %s941_s12 = smov %s655_s13 }
 0x150   : > { %p17_p5 = scmp.ge.s32.totalorder %s20_s17, 4   ;;  %s942_s13 = smov %s659_s14 }
 0x151   : > { %s943_s14 = smov %s806_s5  ;;  %s944_s15 = smov %s667_s16 }
 0x152   : > { %s945_s16 = smov %s947_s28  ;;  %19 = sbr.rel (!%p17_p5) target bundleno = 7 (0x7), region = 81 }
 0x159   :  { %338 = vsyncpa [#allocation3], 1 }
 0x15a   :  { %340 = vsyncpa [#allocation3 + $0x1], 1 }
 0x15b   :  { %341 = vsyncpa [#allocation6], 1 }
 0x15c   :  { %342 = vsyncpa [#allocation4], 1 }
 0x15d   :  { %344 = vsyncpa [#allocation4 + $0x1], 1 }

</bundles_post_ra>
